<compile_context>
chip_gen: v7x
topology: tpu7x:2x2x1
jax: 0.10.0
libtpu: 0.0.40
codegen_flags: <defaults>
</compile_context>

<pallas_src>
import math
from dataclasses import dataclass
from typing import Optional

import jax
import jax.numpy as jnp
from jax.experimental import pallas as pl
from jax.experimental.pallas import tpu as pltpu


@dataclass
class ModelArgs:
    dim: int = 4096
    n_layers: int = 32
    n_heads: int = 32
    n_kv_heads: Optional[int] = None
    vocab_size: int = -1
    multiple_of: int = 256
    ffn_dim_multiplier: Optional[float] = None
    norm_eps: float = 1e-05
    max_batch_size: int = 32
    max_seq_len: int = 2048
    device: str = None


def derive_hidden_dim(args: ModelArgs) -> int:
    hidden_dim = 4 * args.dim
    hidden_dim = int(2 * hidden_dim / 3)
    if args.ffn_dim_multiplier is not None:
        hidden_dim = int(args.ffn_dim_multiplier * hidden_dim)
    hidden_dim = args.multiple_of * ((hidden_dim + args.multiple_of - 1) // args.multiple_of)
    return hidden_dim


def ffn_kernel(x_ref, w12_ref, w3_ref, o_ref):
    """One (tm, dim) row-tile of the FeedForward hot path.

    x_ref  : (tm, dim)            input dtype (cast to bf16 for the MXU)
    w12_ref: (dim, 2*hidden) bf16 == concat([W1.T, W2.T], axis=1)
    w3_ref : (hidden, hidden) bf16 == W3.T            (hidden == dim)
    o_ref  : (tm, hidden)         out_dtype (bf16 by default)
    """
    hidden = w3_ref.shape[0]

    # bf16 MXU inputs, f32 accumulation.
    x = x_ref[...].astype(jnp.bfloat16)

    # Fused w1/w2 matmul: one wide MXU pass over the same x tile.
    h12 = jnp.dot(x, w12_ref[...], preferred_element_type=jnp.float32)
    h1 = h12[:, :hidden]          # w1(x)
    x_v = h12[:, hidden:]         # w2(x)  (valid because hidden == dim)

    # silu in f32.  sigmoid via tanh: a single EUP push per element (EUP slot is
    # separate from the VALU slots) and no exp(-h) overflow corner case.
    sig = 0.5 * (1.0 + jnp.tanh(0.5 * h1))
    gated = (h1 * sig) * x_v
    # NOTE: on v6e/v7x this elementwise chain could run in bf16 (bf16 VALU/EUP);
    # kept f32 here so the same kernel is also optimal on v5e (no bf16 VPU/EUP).

    # Deliberate bf16 round-trip on the gated activations for the MXU; f32 accumulation.
    out = jnp.dot(gated.astype(jnp.bfloat16), w3_ref[...],
                  preferred_element_type=jnp.float32)
    o_ref[...] = out.astype(o_ref.dtype)


def prepare_weights(w1, w2, w3):
    """One-time (init-time) weight prep: transpose, fuse w1/w2, cast to bf16.

    w1, w3: (hidden, dim); w2: (dim, hidden) -- nn.Linear (out, in) layout.
    Returns (w12t, w3t) with w12t: (dim, 2*hidden) bf16, w3t: (hidden, hidden) bf16.
    """
    hidden, dim = w1.shape
    assert w2.shape == (dim, hidden)
    assert w3.shape == (hidden, dim)
    assert hidden == dim, (
        "The reference forward (w2 applied to x, w3 applied to the gated product) "
        "requires hidden_dim == dim.")
    w12t = jnp.concatenate([w1.T, w2.T], axis=1).astype(jnp.bfloat16)  # (dim, 2*hidden)
    w3t = w3.T.astype(jnp.bfloat16)                                    # (hidden, hidden)
    return w12t, w3t


def _pick_tm(M, target=2048):
    """Largest tile <= target such that the grid still has >= 2 steps (v7x: 2 TCs).

    Minimum 16 so bf16 output blocks stay aligned to the (16, 128) packed tiling.
    M that is not a multiple of tm is handled by padding in feed_forward().
    """
    for cand in (2048, 1024, 512, 256, 128, 64, 32, 16):
        if cand <= target and M >= 2 * cand:
            return cand
    return 16


def feed_forward(x, w12t, w3t, *, tm=None, out_dtype=jnp.bfloat16):
    """x: (batch, seq, dim).  w12t/w3t from prepare_weights()."""
    batch, seq, dim = x.shape
    dim_w, two_hidden = w12t.shape
    hidden = two_hidden // 2
    assert dim_w == dim and hidden == dim and w3t.shape == (hidden, hidden)
    if out_dtype is None:
        out_dtype = x.dtype

    M = batch * seq
    if tm is None:
        tm = _pick_tm(M)
    grid_m = pl.cdiv(M, tm)
    M_pad = grid_m * tm

    x2d = x.reshape(M, dim)
    if M_pad != M:
        # Pad rows once; zero rows produce zero outputs and are sliced off below.
        x2d = jnp.pad(x2d, ((0, M_pad - M), (0, 0)))

    # Advisory cost hint for the surrounding XLA schedule.
    in_itemsize = jnp.dtype(x.dtype).itemsize
    out_itemsize = jnp.dtype(out_dtype).itemsize
    flops = 2 * M_pad * dim * two_hidden + 2 * M_pad * hidden * hidden
    bytes_accessed = (M_pad * dim * in_itemsize            # x
                      + dim * two_hidden * 2               # fused w1/w2 (bf16)
                      + hidden * hidden * 2                # w3 (bf16)
                      + M_pad * hidden * out_itemsize)     # out
    cost = pl.CostEstimate(flops=flops, transcendentals=M_pad * hidden,
                           bytes_accessed=bytes_accessed)

    out2d = pl.pallas_call(
        ffn_kernel,
        out_shape=jax.ShapeDtypeStruct((M_pad, hidden), out_dtype),
        grid_spec=pltpu.PrefetchScalarGridSpec(
            num_scalar_prefetch=0,
            grid=(grid_m,),
            in_specs=[
                pl.BlockSpec((tm, dim), lambda i: (i, 0)),
                # Constant index_map -> resident weights; single-buffered (no wasted
                # second pipeline buffer).
                pl.BlockSpec((dim, two_hidden), lambda i: (0, 0),
                             pipeline_mode=pl.Buffered(1)),
                pl.BlockSpec((hidden, hidden), lambda i: (0, 0),
                             pipeline_mode=pl.Buffered(1)),
            ],
            out_specs=pl.BlockSpec((tm, hidden), lambda i: (i, 0)),
        ),
        compiler_params=pltpu.CompilerParams(
            dimension_semantics=("parallel",),
            vmem_limit_bytes=48 * 1024 * 1024),
        cost_estimate=cost,
    )(x2d, w12t, w3t)

    if M_pad != M:
        out2d = out2d[:M]
    return out2d.reshape(batch, seq, hidden)


def feed_forward_ref(x, w1, w2, w3):
    """Pure-JAX f32 reference mirroring the PyTorch forward exactly."""
    h1 = x @ w1.T
    swish = h1 * jax.nn.sigmoid(h1)
    x_v = x @ w2.T
    return (swish * x_v) @ w3.T


if __name__ == "__main__":
    args = ModelArgs(dim=128, multiple_of=128, ffn_dim_multiplier=0.3)
    hidden_dim = derive_hidden_dim(args)
    assert hidden_dim == args.dim == 128, (args.dim, hidden_dim)

    batch, seq, dim = 2, 16, args.dim

    key = jax.random.PRNGKey(0)
    kx, k1, k2, k3 = jax.random.split(key, 4)
    x = jax.random.normal(kx, (batch, seq, dim), dtype=jnp.float32)

    # nn.Linear(in, out, bias=False) weight shape is (out, in), init U(-1/sqrt(in), 1/sqrt(in)).
    def linear_init(k, out_f, in_f):
        bound = 1.0 / math.sqrt(in_f)
        return jax.random.uniform(k, (out_f, in_f), jnp.float32, -bound, bound)

    w1 = linear_init(k1, hidden_dim, args.dim)   # Linear(dim, hidden)
    w2 = linear_init(k2, args.dim, hidden_dim)   # Linear(hidden, dim)
    w3 = linear_init(k3, hidden_dim, args.dim)   # Linear(dim, hidden)

    # One-time weight prep (transpose + fuse + bf16) -- NOT in the per-call forward path.
    w12t, w3t = prepare_weights(w1, w2, w3)

    ref = feed_forward_ref(x, w1, w2, w3)

    # Default path: bf16 output (HBM-bound -> fewer writeback bytes).
    out = feed_forward(x, w12t, w3t)
    out = jax.block_until_ready(out)
    assert out.shape == (batch, seq, hidden_dim)
    assert out.dtype == jnp.bfloat16
    err = float(jnp.max(jnp.abs(out.astype(jnp.float32) - ref)))
    assert jnp.allclose(out.astype(jnp.float32), ref, atol=4e-2, rtol=4e-2), err

    # Ragged-M path (M=18 not a multiple of tm -> padded grid) with f32 output.
    x_odd = jax.random.normal(kx, (batch, 9, dim), dtype=jnp.float32)
    ref_odd = feed_forward_ref(x_odd, w1, w2, w3)
    out_odd = jax.block_until_ready(
        feed_forward(x_odd, w12t, w3t, out_dtype=jnp.float32))
    assert out_odd.shape == (batch, 9, hidden_dim)
    err_odd = float(jnp.max(jnp.abs(out_odd - ref_odd)))
    assert jnp.allclose(out_odd, ref_odd, atol=3e-2, rtol=3e-2), err_odd

    print("KERNEL_OK")
</pallas_src>

<mosaic_0001>
module attributes {stable_mosaic.version = 11 : i64} {
  func.func @ffn_kernel(%arg0: i32, %arg1: memref<16x128xf32, #tpu.memory_space<vmem>>, %arg2: memref<128x256xbf16, #tpu.memory_space<vmem>>, %arg3: memref<128x128xbf16, #tpu.memory_space<vmem>>, %arg4: memref<16x128xbf16, #tpu.memory_space<vmem>>) attributes {dimension_semantics = [#tpu.dimension_semantics<parallel>], iteration_bounds = array<i64: 2>, scalar_prefetch = 0 : i64, scratch_operands = 0 : i64, tpu.core_type = #tpu.core_type<tc>, window_params = [{transform_indices = @transform_0, window_bounds = array<i64: 16, 128>}, {pipeline_mode = #tpu.pipeline_mode<synchronous>, transform_indices = @transform_1, window_bounds = array<i64: 128, 256>}, {pipeline_mode = #tpu.pipeline_mode<synchronous>, transform_indices = @transform_2, window_bounds = array<i64: 128, 128>}, {transform_indices = @transform_3, window_bounds = array<i64: 16, 128>}]} {
    %c0 = arith.constant 0 : index
    %c0_0 = arith.constant 0 : index
    %0 = vector.load %arg1[%c0, %c0_0] : memref<16x128xf32, #tpu.memory_space<vmem>>, vector<16x128xf32>
    %1 = arith.truncf %0 : vector<16x128xf32> to vector<16x128xbf16>
    %c0_1 = arith.constant 0 : index
    %c0_2 = arith.constant 0 : index
    %2 = vector.load %arg2[%c0_1, %c0_2] : memref<128x256xbf16, #tpu.memory_space<vmem>>, vector<128x256xbf16>
    %cst = arith.constant dense<0.000000e+00> : vector<16x256xf32>
    %3 = tpu.matmul %1, %2, %cst {dimension_numbers = #tpu.dot_dimension_numbers<[1], [0], [0], [1], [0, 0, 1, 1], [], []>} : vector<16x128xbf16>, vector<128x256xbf16>, vector<16x256xf32> -> vector<16x256xf32>
    %4 = vector.extract_strided_slice %3 {offsets = [0, 0], sizes = [16, 128], strides = [1, 1]} : vector<16x256xf32> to vector<16x128xf32>
    %5 = vector.extract_strided_slice %3 {offsets = [0, 128], sizes = [16, 128], strides = [1, 1]} : vector<16x256xf32> to vector<16x128xf32>
    %cst_3 = arith.constant 5.000000e-01 : f32
    %6 = vector.broadcast %cst_3 : f32 to vector<16x128xf32>
    %7 = arith.mulf %6, %4 : vector<16x128xf32>
    %8 = math.tanh %7 : vector<16x128xf32>
    %cst_4 = arith.constant 1.000000e+00 : f32
    %9 = vector.broadcast %cst_4 : f32 to vector<16x128xf32>
    %10 = arith.addf %9, %8 : vector<16x128xf32>
    %cst_5 = arith.constant 5.000000e-01 : f32
    %11 = vector.broadcast %cst_5 : f32 to vector<16x128xf32>
    %12 = arith.mulf %11, %10 : vector<16x128xf32>
    %13 = arith.mulf %4, %12 : vector<16x128xf32>
    %14 = arith.mulf %13, %5 : vector<16x128xf32>
    %15 = arith.truncf %14 : vector<16x128xf32> to vector<16x128xbf16>
    %c0_6 = arith.constant 0 : index
    %c0_7 = arith.constant 0 : index
    %16 = vector.load %arg3[%c0_6, %c0_7] : memref<128x128xbf16, #tpu.memory_space<vmem>>, vector<128x128xbf16>
    %cst_8 = arith.constant dense<0.000000e+00> : vector<16x128xf32>
    %17 = tpu.matmul %15, %16, %cst_8 {dimension_numbers = #tpu.dot_dimension_numbers<[1], [0], [0], [1], [0, 0, 1, 1], [], []>} : vector<16x128xbf16>, vector<128x128xbf16>, vector<16x128xf32> -> vector<16x128xf32>
    %18 = arith.truncf %17 : vector<16x128xf32> to vector<16x128xbf16>
    %c0_9 = arith.constant 0 : index
    %c0_10 = arith.constant 0 : index
    %19 = vector.load %arg4[%c0_9, %c0_10] : memref<16x128xbf16, #tpu.memory_space<vmem>>, vector<16x128xbf16>
    tpu.vector_store %arg4[%c0_9, %c0_10], %18 {strides = array<i32>} : memref<16x128xbf16, #tpu.memory_space<vmem>>, vector<16x128xbf16>,
    return
  }
  func.func @transform_0(%arg0: i32) -> (i32, i32) {
    %c0_i32 = arith.constant 0 : i32
    %c0_i32_0 = arith.constant 0 : i32
    return %arg0, %c0_i32 : i32, i32
  }
  func.func @transform_1(%arg0: i32) -> (i32, i32) {
    %c0_i32 = arith.constant 0 : i32
    %c0_i32_0 = arith.constant 0 : i32
    %c0_i32_1 = arith.constant 0 : i32
    return %c0_i32, %c0_i32_0 : i32, i32
  }
  func.func @transform_2(%arg0: i32) -> (i32, i32) {
    %c0_i32 = arith.constant 0 : i32
    %c0_i32_0 = arith.constant 0 : i32
    %c0_i32_1 = arith.constant 0 : i32
    return %c0_i32, %c0_i32_0 : i32, i32
  }
  func.func @transform_3(%arg0: i32) -> (i32, i32) {
    %c0_i32 = arith.constant 0 : i32
    %c0_i32_0 = arith.constant 0 : i32
    return %arg0, %c0_i32 : i32, i32
  }
}

</mosaic_0001>

<bundles_post_ra>
// kernel: tpu_custom_call.1
= control target key start
LH: loop header
LB: loop body
LE: loop exit
PB: predicated region body
PF: predicated region fallthrough
CT: control target
= control target key end

     0   :  { %8 = vsyncpa [#allocation3], 0  ;;  %s1227_s0 = inlined_call_operand.hbm [shape: f32[32,128], index: 0, kind: input, shape index: {}]   ;;  %s1228_s1 = inlined_call_operand.hbm [shape: bf16[128,256], index: 1, kind: input, shape index: {}]   ;;  %s1229_s2 = inlined_call_operand.hbm [shape: bf16[128,128], index: 2, kind: input, shape index: {}]   ;;  %s1230_s3 = inlined_call_operand.hbm [shape: bf16[32,128], index: 3, kind: output, shape index: {}]  }
   0x1   :  { %10 = vsyncpa [#allocation3 + $0x1], 0 }
   0x2   :  { %11 = vsyncpa [#allocation6], 0 }
   0x3   :  { %12 = vsyncpa [#allocation4], 0 }
   0x4   :  { %14 = vsyncpa [#allocation4 + $0x1], 0  ;;  %s982_s12 = smov 0   ;;  %s984_s13 = smov 0  }
   0x5   :  { %s986_s14 = smov 0   ;;  %s988_s15 = smov 0  }
   0x6 LB: > { %s1003_s16 = sadd.s32 4294967295, %s947_s15   ;;  %s597_s17 = sadd.s32 4294967294, %s947_s15   ;;  %s947_s15 = sphi %s988_s15, %s1250_s15   ;;  %s943_s14 = sphi %s986_s14, %s1249_s14   ;;  %s939_s13 = sphi %s984_s13, %s1248_s13   ;;  %s935_s12 = sphi %s982_s12, %s1247_s12  }
   0x7   : > { %p40_p0 = scmp.ne.s32.totalorder %s939_s13, %s935_s12  ;;  %p1231_p1 = scmp.eq.s32.totalorder %s1003_s16, 0 }
   0x8   : > { %p112_p3 = scmp.eq.s32.totalorder %s597_s17, 1  ;;  %p598_p5 = scmp.ge.s32.totalorder %s947_s15, 1 }
   0x9   : > { %p1012_p4 = por %p1231_p1, %p40_p0  ;;  %p119_p7 = scmp.lt.s32.totalorder %s947_s15, 3 }
   0xa   : > { %p1017_p6 = por %p112_p3, %p40_p0  ;;  %s949_s21 = smov [#allocation5]  }
   0xb   : > { %s1234_s18 = scalar_select %p1012_p4, 1, 0 }
   0xc   : > { %s1235_s19 = scalar_select %p1017_p6, 1, 0 }
   0xd   : > { %p1022_p8 = pnand %p598_p5, %p119_p7  ;;  %s131_s22 = sshll.u32 %s949_s21, 4  ;;  %s1026_s22 = int_to_ptr.vmem [resolvable:$true] %s131_s22 }
   0xe   : > { %s950_s24 = smov [#allocation7]   ;;  %s791_s28 = scalar_lea.hbm %s1228_s1, 2048 }
   0xf   : > { %p691_p9 = pneg %p1022_p8  ;;  %s144_s25 = sshll.u32 %s950_s24, 4  ;;  %s1037_s25 = int_to_ptr.vmem [resolvable:$true] %s144_s25 }
  0x10   : > { %p792_p12 = scmp.ne.s32.totalorder %s1228_s1, %s791_s28  ;;  %p798_p5 = scmp.lt.u32.totalorder %s791_s28, %s1228_s1 }
  0x11   : > { %p1033_p11 = pnand %p691_p9, %p1231_p1 }
  0x13   : > { %p793_p13 = pneg %p1033_p11 }
  0x15   : > { %p794_p0 = pnand %p793_p13, %p792_p12 }
  0x17   : > { %p795_p3 = pneg %p794_p0 }
  0x19   : > { %p800_p7 = pnand %p798_p5, %p795_p3 }
  0x1b   : > { %803 = shalt.err (!%p800_p7)
}
  0x1c   : > { %s804_s6 = scalar_lea.vmem %s1026_s22, 2048  ;;  %p812_p2 = scmp.lt.s32.totalorder %s1026_s22, %s1026_s22 }
  0x1d   : > { %p805_p9 = scmp.ne.s32.totalorder %s1026_s22, %s804_s6  ;;  %p813_p12 = scmp.lt.s32.totalorder %s804_s6, %s804_s6 }
  0x1f   : > { %p807_p10 = pnand %p805_p9, %p793_p13  ;;  %p814_p0 = por %p813_p12, %p812_p2 }
  0x21   : > { %p808_p1 = pneg %p807_p10 }
  0x23   : > { %p815_p6 = pnand %p814_p0, %p808_p1 }
  0x25   : > { %818 = shalt.err (!%p815_p6)
}
  0x26   : > { %s951_s7 = smov 128   ;;  %s952_s8 = smov 8  }
  0x27   : > { %694 = dma.hbm_to_vmem [thread:$0]  (!%p1033_p11), %s1228_s1, 2048, %s1026_s22, [#allocation6], %s951_s7, %s951_s7, %s952_s8  }
  0x28   : > { %s819_s21 = scalar_lea.hbm %s1229_s2, 1024 }
  0x29   : > { %p820_p1 = scmp.ne.s32.totalorder %s1229_s2, %s819_s21  ;;  %p826_p10 = scmp.lt.u32.totalorder %s819_s21, %s1229_s2 }
  0x2b   : > { %p822_p2 = pnand %p820_p1, %p793_p13 }
  0x2d   : > { %p823_p6 = pneg %p822_p2 }
  0x2f   : > { %p828_p3 = pnand %p826_p10, %p823_p6 }
  0x31   : > { %831 = shalt.err (!%p828_p3)
}
  0x32   : > { %s832_s22 = scalar_lea.vmem %s1037_s25, 1024  ;;  %p840_p12 = scmp.lt.s32.totalorder %s1037_s25, %s1037_s25 }
  0x33   : > { %p833_p5 = scmp.ne.s32.totalorder %s1037_s25, %s832_s22  ;;  %p841_p0 = scmp.lt.s32.totalorder %s832_s22, %s832_s22 }
  0x35   : > { %p835_p7 = pnand %p833_p5, %p793_p13  ;;  %p842_p1 = por %p841_p0, %p840_p12 }
  0x37   : > { %p836_p9 = pneg %p835_p7 }
  0x39   : > { %p843_p2 = pnand %p842_p1, %p836_p9 }
  0x3b   : > { %846 = shalt.err (!%p843_p2)
}
  0x3c   : > { %s953_s29 = smov 64   ;;  %s954_s30 = smov 4  }
  0x3d   : > { %697 = dma.hbm_to_vmem [thread:$0]  (!%p1033_p11), %s1229_s2, 1024, %s1037_s25, [#allocation6], %s953_s29, %s953_s29, %s954_s30  }
  0x3e   : > { %s1095_s6 = sadd.s32 1, %s947_s15   ;;  %s27_s10 = sadd.s32 1, %s943_s14 }
  0x3f   : > { %s24_s9 = ssub.s32 %s947_s15, %s1095_s6  ;;  %p34_p6 = scmp.ne.s32.totalorder %s943_s14, %s939_s13 }
  0x40   : > { %p25_p13 = scmp.eq.s32.totalorder %s24_s9, 0  ;;  %p35_p10 = scmp.eq.s32.totalorder %s947_s15, 0 }
  0x41   : > { %p1238_p5 = scmp.eq.s32.totalorder %s1003_s16, 1  ;;  %p708_p9 = scmp.lt.s32.totalorder %s947_s15, 2 }
  0x42   : > { %s1104_s11 = scalar_select %p25_p13, %s943_s14, %s27_s10  }
  0x43   : > { %p36_p3 = por %p35_p10, %p34_p6  ;;  %p1108_p7 = por %p1238_p5, %p34_p6 }
  0x44   : > { %s158_s23 = sand.u32 1, %s943_s14   ;;  %s641_s25 = sshll.u32 %s947_s15, 8 }
  0x45   : > { %s1239_s17 = scalar_select %p1108_p7, 1, 0 }
  0x46   : > { %s602_s21 = sshll.u32 %s158_s23, 4  ;;  %s1118_s27 = scalar_lea.hbm %s1227_s0, %s641_s25 }
  0x47   : > { %s162_s28 = scalar_lea.vmem [#allocation2], %s602_s21  ;;  %p1122_p11 = pnand %p708_p9, %p36_p3 }
  0x48   : > { %s169_s22 = sshll.u32 %s162_s28, 4  ;;  %s1126_s30 = scalar_lea.sflag [#allocation3], %s158_s23  ;;  %s1120_s22 = int_to_ptr.vmem [resolvable:$true] %s169_s22 }
  0x49   : > { %s847_s4 = scalar_lea.hbm %s1118_s27, 256  ;;  %p849_p0 = pneg %p1122_p11 }
  0x4a   : > { %p848_p12 = scmp.ne.s32.totalorder %s1118_s27, %s847_s4  ;;  %s852_s10 = scalar_lea.hbm %s1227_s0, 512 }
  0x4b   : > { %p853_p13 = scmp.lt.u32.totalorder %s1118_s27, %s1227_s0  ;;  %p854_p6 = scmp.lt.u32.totalorder %s852_s10, %s847_s4 }
  0x4c   : > { %p850_p1 = pnand %p849_p0, %p848_p12  ;;  %p856_p3 = scmp.lt.u32.totalorder %s847_s4, %s1118_s27 }
  0x4d   : > { %p855_p10 = por %p854_p6, %p853_p13 }
  0x4e   : > { %p851_p2 = pneg %p850_p1 }
  0x4f   : > { %p857_p5 = por %p856_p3, %p855_p10 }
  0x51   : > { %p858_p9 = pnand %p857_p5, %p851_p2 }
  0x53   : > { %861 = shalt.err (!%p858_p9)
}
  0x54   : > { %s862_s23 = scalar_lea.vmem %s1120_s22, 256  ;;  %s955_s24 = smov [#allocation2]  }
  0x55   : > { %p863_p12 = scmp.ne.s32.totalorder %s1120_s22, %s862_s23  ;;  %s867_s26 = sshll.u32 %s955_s24, 4  ;;  %s868_s26 = int_to_ptr.vmem [resolvable:$false] %s867_s26 }
  0x56   : > { %s869_s28 = scalar_lea.vmem %s868_s26, 512  ;;  %p870_p4 = scmp.lt.s32.totalorder %s1120_s22, %s868_s26 }
  0x57   : > { %p865_p1 = pnand %p863_p12, %p849_p0  ;;  %p871_p13 = scmp.lt.s32.totalorder %s869_s28, %s862_s23 }
  0x59   : > { %p866_p7 = pneg %p865_p1  ;;  %p872_p6 = por %p871_p13, %p870_p4 }
  0x5b   : > { %p873_p10 = pnand %p872_p6, %p866_p7 }
  0x5d   : > { %876 = shalt.err (!%p873_p10)
}
  0x5e   : > { %701 = dma.hbm_to_vmem [thread:$0]  (!%p1122_p11), %s1118_s27, 256, %s1120_s22, %s1126_s30, %s951_s7, %s951_s7, %s952_s8  }
  0x5f   : > { %181 = sbr.rel (%p1022_p8) target bundleno = 608 (0x260), region = 32  ;;  %s1160_s4 = sand.u32 (!%p1022_p8), 1, %s939_s13  }
  0x60   : > { %s606_s5 = sshll.u32 (!%p1022_p8), %s1160_s4, 4  ;;  %s184_s9 = scalar_lea.sflag (!%p1022_p8), [#allocation3], %s1160_s4 }
  0x61   : > { %s1164_s10 = scalar_lea.vmem (!%p1022_p8), [#allocation2], %s606_s5  ;;  %p1241_p4 = scmp.ne.s32.totalorder (!%p1022_p8), %s1234_s18, 0 }
  0x66   : > { %922 = dma.done.wait (%p1241_p4), %s184_s9, 256  }
  0x67   : > { %924 = vsyncadd (%p1241_p4), %s184_s9, 4294967040  ;;  %p1242_p7 = scmp.eq.s32.totalorder %s1003_s16, 0 }
  0x69   : > { %926 = dma.done.wait (%p1242_p7), [#allocation6], 3072   ;;  %p1243_p8 = pmov %p1242_p7 }
  0x6a   : > { %v956_v0 = vmov 0   ;;  %v957_v1 = vmov 0.0   ;;  %v755_v2 = vld [vmem:[#allocation5 + $0x4] ss:$8 sps:$4 sm:$0xff]   ;;  %v757_v3 = vld [vmem:[#allocation5] ss:$8 sps:$4 sm:$0xff]  }
  0x6b   : > { %928 = vsyncadd (%p1243_p8), [#allocation6], 4294964224  ;;  %352 = vmatprep.mubr.bf16.mxu0 %v956_v0  ;;  %659 = vmatprep.subr.bf16.mxu1 %v957_v1  ;;  %v758_v4 = vld [vmem:[#allocation5 + $0x14] ss:$8 sps:$4 sm:$0xff]   ;;  %v760_v5 = vld [vmem:[#allocation5 + $0x10] ss:$8 sps:$4 sm:$0xff]  }
  0x6c   : > { %320 = vmatprep.subr.bf16.mxu0 %v755_v2  ;;  %v761_v6 = vld [vmem:[#allocation5 + $0x24] ss:$8 sps:$4 sm:$0xff]   ;;  %v763_v7 = vld [vmem:[#allocation5 + $0x20] ss:$8 sps:$4 sm:$0xff]   ;;  %v764_v8 = vld [vmem:[#allocation5 + $0x34] ss:$8 sps:$4 sm:$0xff]  }
  0x6d   : > { %321 = vmatpush1.bf16.msra.mxu0 %v757_v3  ;;  %v766_v9 = vld [vmem:[#allocation5 + $0x30] ss:$8 sps:$4 sm:$0xff]   ;;  %v767_v10 = vld [vmem:[#allocation5 + $0x44] ss:$8 sps:$4 sm:$0xff]   ;;  %v769_v12 = vld [vmem:[#allocation5 + $0x40] ss:$8 sps:$4 sm:$0xff]  }
  0x6e   : > { %322 = vmatprep.subr.bf16.mxu0 %v758_v4  ;;  %v779_v11 = vld [vmem:[#allocation7] sm:$0xff]   ;;  %v780_v13 = vld [vmem:[#allocation7 + $0x8] sm:$0xff]   ;;  %v770_v14 = vld [vmem:[#allocation5 + $0x54] ss:$8 sps:$4 sm:$0xff]   ;;  %vm958_vm0 = vmmov 0   ;;  %s609_s18 = sshll.u32 %s1160_s4, 3 }
  0x6f   : > { %660 = vmatpush3.bf16.msra.mxu1 %v779_v11  ;;  %v772_v15 = vld [vmem:[#allocation5 + $0x50] ss:$8 sps:$4 sm:$0xff]   ;;  %v773_v16 = vld [vmem:[#allocation5 + $0x64] ss:$8 sps:$4 sm:$0xff]   ;;  %v775_v17 = vld [vmem:[#allocation5 + $0x60] ss:$8 sps:$4 sm:$0xff]   ;;  %675 = vmatprep.mubr.msk.bf16.mxu1 %vm958_vm0, %v957_v1 }
  0x70   : > { %661 = vmatprep.subr.bf16.mxu1 %v957_v1  ;;  %v776_v18 = vld [vmem:[#allocation5 + $0x74] ss:$8 sps:$4 sm:$0xff]   ;;  %v778_v19 = vld [vmem:[#allocation5 + $0x70] ss:$8 sps:$4 sm:$0xff]   ;;  %v783_v25 = vld [vmem:[#allocation7 + $0x20] sm:$0xff]   ;;  %s217_s20 = scalar_lea.vmem [#allocation8], %s609_s18 }
  0x71   : > { %323 = vmatpush1.bf16.msra.mxu0 %v760_v5  ;;  %v221_v20 = vld [vmem:[%s1164_s10] sm:$0xff]  ;;  %v222_v21 = vld [vmem:[%s1164_s10 + $0x8] sm:$0xff]  ;;  %s505_s7 = sshll.u32 %s217_s20, 4  ;;  %s644_s8 = sshll.u32 %s1003_s16, 7  ;;  %s1178_s7 = int_to_ptr.vmem [resolvable:$true] %s505_s7 }
  0x72   : > { %324 = vmatprep.subr.bf16.mxu0 %v761_v6  ;;  %v223_v22 = vpack.c.bf16 %v222_v21, %v221_v20  ;;  %v781_v23 = vld [vmem:[#allocation7 + $0x10] sm:$0xff]   ;;  %v782_v24 = vld [vmem:[#allocation7 + $0x18] sm:$0xff]   ;;  %v784_v26 = vld [vmem:[#allocation7 + $0x28] sm:$0xff]   ;;  %s1183_s29 = scalar_lea.hbm %s1230_s3, %s644_s8  ;;  %s492_s30 = scalar_lea.sflag [#allocation4], %s1160_s4 }
  0x73   : > { %662 = vmatpush3.bf16.msra.mxu1 %v780_v13  ;;  %v785_v27 = vld [vmem:[#allocation7 + $0x30] sm:$0xff]   ;;  %v786_v28 = vld [vmem:[#allocation7 + $0x38] sm:$0xff]   ;;  %s877_s21 = scalar_lea.vmem %s1178_s7, 128  ;;  %p1244_p0 = scmp.ne.s32.totalorder %s1239_s17, 0 }
  0x74   : > { %663 = vmatprep.subr.bf16.mxu1 %v957_v1  ;;  %p878_p11 = scmp.ne.s32.totalorder %s1178_s7, %s877_s21  ;;  %s959_s16 = smov [#allocation8]  }
  0x75   : > { %325 = vmatpush1.bf16.msra.mxu0 %v763_v7  ;;  %s881_s25 = sshll.u32 %s959_s16, 4  ;;  %s882_s25 = int_to_ptr.vmem [resolvable:$false] %s881_s25 }
  0x76   : > { %326 = vmatprep.subr.bf16.mxu0 %v764_v8  ;;  %p879_p2 = pnand %p878_p11, %p1244_p0  ;;  %s883_s23 = scalar_lea.vmem %s882_s25, 256 }
  0x77   : > { %664 = vmatpush3.bf16.msra.mxu1 %v781_v23  ;;  %p884_p5 = scmp.lt.s32.totalorder %s1178_s7, %s882_s25  ;;  %p885_p9 = scmp.lt.s32.totalorder %s883_s23, %s877_s21 }
  0x78   : > { %665 = vmatprep.subr.bf16.mxu1 %v957_v1  ;;  %p880_p3 = pneg %p879_p2 }
  0x79   : > { %327 = vmatpush1.bf16.msra.mxu0 %v766_v9  ;;  %p886_p12 = por %p885_p9, %p884_p5 }
  0x7a   : > { %328 = vmatprep.subr.bf16.mxu0 %v767_v10 }
  0x7b   : > { %666 = vmatpush3.bf16.msra.mxu1 %v782_v24  ;;  %p887_p1 = pnand %p886_p12, %p880_p3 }
  0x7c   : > { %667 = vmatprep.subr.bf16.mxu1 %v957_v1 }
  0x7d   : > { %329 = vmatpush1.bf16.msra.mxu0 %v769_v12 }
  0x7e   : > { %330 = vmatprep.subr.bf16.mxu0 %v770_v14 }
  0x7f   : > { %668 = vmatpush3.bf16.msra.mxu1 %v783_v25 }
  0x80   : > { %669 = vmatprep.subr.bf16.mxu1 %v957_v1 }
  0x81   : > { %331 = vmatpush1.bf16.msra.mxu0 %v772_v15 }
  0x82   : > { %332 = vmatprep.subr.bf16.mxu0 %v773_v16 }
  0x83   : > { %670 = vmatpush3.bf16.msra.mxu1 %v784_v26 }
  0x84   : > { %671 = vmatprep.subr.bf16.mxu1 %v957_v1 }
  0x85   : > { %333 = vmatpush1.bf16.msra.mxu0 %v775_v17 }
  0x86   : > { %334 = vmatprep.subr.bf16.mxu0 %v776_v18 }
  0x87   : > { %672 = vmatpush3.bf16.msra.mxu1 %v785_v27 }
  0x88   : > { %673 = vmatprep.subr.bf16.mxu1 %v957_v1 }
  0x89   : > { %335 = vmatpush1.bf16.msra.mxu0 %v778_v19 }
  0x8b   : > { %674 = vmatpush3.bf16.msra.mxu1 %v786_v28 }
  0x8c   : > { %353 = vmatmul.mubr.bf16.vlgmr.msra.gmra.mrb[0].mxu0 %v223_v22 }
 0x15f   : > { %v354_v29 = vpop.f32.mrb[0].mxu0 }
 0x160   : > { %v363_v30 = vmul.f32 0.5, %v354_v29  ;;  %v356_v31 = vpop.f32.mrb[1].mxu0 }
 0x161   : > { %v358_v32 = vpop.f32.mrb[2].mxu0 }
 0x162   : > { %787 = vtanh.f32 %v363_v30  ;;  %v364_v33 = vmul.f32 0.5, %v358_v32  ;;  %v360_v34 = vpop.f32.mrb[3].mxu0 }
 0x164   : > { %789 = vtanh.f32 %v364_v33 }
 0x16c   : > { %v788_v35 = vpop.eup %787 }
 0x16d   : > { %v367_v36 = vadd.f32 1.0, %v788_v35 }
 0x16e   : > { %v790_v37 = vpop.eup %789 }
 0x16f   : > { %v369_v38 = vmul.f32 0.5, %v367_v36  ;;  %v368_v39 = vadd.f32 1.0, %v790_v37 }
 0x171   : > { %v371_v40 = vmul.f32 %v369_v38, %v354_v29  ;;  %v370_v41 = vmul.f32 0.5, %v368_v39 }
 0x173   : > { %v373_v42 = vmul.f32 %v371_v40, %v356_v31  ;;  %v372_v43 = vmul.f32 %v370_v41, %v358_v32 }
 0x175   : > { %v374_v44 = vmul.f32 %v372_v43, %v360_v34 }
 0x177   : > { %v375_v45 = vpack.c.bf16 %v374_v44, %v373_v42 }
 0x179   : > { %676 = vmatmul.mubr.bf16.vlgmr.msra.gmra.mrb[0].mxu1 %v375_v45 }
 0x24c   : > { %v474_v46 = vpop.f32.mrb[0].mxu1 }
 0x24d   : > { %v677_v47 = vpop.f32.mrb[1].mxu1 }
 0x24e   : > { %v477_v48 = vpop.f32.mrb[2].mxu1 }
 0x24f   : > { %v648_v49 = vpack.c.bf16 %v477_v48, %v474_v46  ;;  %v678_v50 = vpop.f32.mrb[3].mxu1 }
 0x251   : > { %649 = vst [vmem:[%s217_s20] sm:$0xff] %v648_v49  }
 0x252   : > { %890 = shalt.err (!%p887_p1)
}
 0x253   : > { %s891_s24 = scalar_lea.hbm %s1183_s29, 128  ;;  %s895_s5 = scalar_lea.hbm %s1230_s3, 256 }
 0x254   : > { %p892_p13 = scmp.ne.s32.totalorder %s1183_s29, %s891_s24  ;;  %p896_p4 = scmp.lt.u32.totalorder %s1183_s29, %s1230_s3 }
 0x255   : > { %p897_p7 = scmp.lt.u32.totalorder %s895_s5, %s891_s24  ;;  %p899_p11 = scmp.lt.u32.totalorder %s891_s24, %s1183_s29 }
 0x256   : > { %p893_p6 = pnand %p892_p13, %p1244_p0 }
 0x257   : > { %p898_p8 = por %p897_p7, %p896_p4 }
 0x258   : > { %p894_p10 = pneg %p893_p6 }
 0x259   : > { %p900_p2 = por %p899_p11, %p898_p8 }
 0x25b   : > { %p901_p3 = pnand %p900_p2, %p894_p10 }
 0x25d   : > { %904 = shalt.err (!%p901_p3)
}
 0x25e   : > { %s960_s18 = smov 64   ;;  %s961_s20 = smov 4  }
 0x25f   : > { %689 = dma.vmem_to_hbm [thread:$0]  (%p1244_p0), %s1178_s7, 128, %s1183_s29, %s492_s30, %s960_s18, %s960_s18, %s961_s20  }
 0x260 PF: > { %s520_s8 = sand.u32 1, %s935_s12   ;;  %p1245_p5 = scmp.ne.s32.totalorder %s1235_s19, 0 }
 0x261   : > { %p1246_p9 = scmp.ge.s32.totalorder %s947_s15, 2  ;;  %s521_s27 = scalar_lea.sflag [#allocation4], %s520_s8 }
 0x263   : > { %p703_p12 = pnand %p1246_p9, %p1245_p5 }
 0x265   : > { %930 = dma.done.wait (!%p703_p12), %s521_s27, 128  }
 0x266   : > { %932 = vsyncadd (!%p703_p12), %s521_s27, 4294967168  ;;  %p17_p1 = scmp.ge.s32.totalorder %s1095_s6, 4   ;;  %s1247_s12 = smov %s939_s13 }
 0x267   : > { %s1248_s13 = smov %s943_s14  ;;  %s1249_s14 = smov %s1104_s11 }
 0x268   : > { %s1250_s15 = smov %s1095_s6  ;;  %19 = sbr.rel (!%p17_p1) target bundleno = 6 (0x6), region = 85 }
 0x26f   :  { %526 = vsyncpa [#allocation3], 1 }
 0x270   :  { %528 = vsyncpa [#allocation3 + $0x1], 1 }
 0x271   :  { %529 = vsyncpa [#allocation6], 1 }
 0x272   :  { %530 = vsyncpa [#allocation4], 1 }
 0x273   :  { %532 = vsyncpa [#allocation4 + $0x1], 1 }

</bundles_post_ra>
